<compile_context>
chip_gen: v6e
topology: v6e:2x2x1
jax: 0.10.0
libtpu: 0.0.40
codegen_flags: <defaults>
</compile_context>

<pallas_src>
import functools

import jax
import jax.numpy as jnp
from jax.experimental import pallas as pl
from jax.experimental.pallas import tpu as pltpu


def _round_up(x, m):
    return ((x + m - 1) // m) * m


def _vmem_capacity_bytes():
    """Physical VMEM per core, with a device_kind-keyed fallback."""
    try:
        cap = int(getattr(pltpu.get_tpu_info(), "vmem_capacity_bytes", 0))
        if cap > 0:
            return cap
    except Exception:
        pass
    try:
        kind = jax.devices()[0].device_kind.lower()
        if "v5" in kind or "v6" in kind:
            return 128 * 1024 * 1024
    except Exception:
        pass
    return 64 * 1024 * 1024  # v7x (smallest) value


def _ls_label_kernel(x_ref, lbl_ref, out_ref, *, confidence, smoothing,
                     batch, tile_rows):
    """Per-tile partial loss sum; targets are integer class indices."""
    x = x_ref[...].astype(jnp.float32)                         # (TB, C)
    tb, c = x.shape

    # Numerically-stable logsumexp along the class (lane) axis.
    m = jnp.max(x, axis=-1, keepdims=True)                     # (TB, 1)
    lse = jnp.log(jnp.sum(jnp.exp(x - m), axis=-1, keepdims=True)) + m

    # Merged weighted reduction (confidence + smoothing == 1):
    #   loss = lse - sum((confidence*onehot + smoothing/C) * x, -1)
    base = smoothing / c
    col = jax.lax.broadcasted_iota(jnp.int32, (tb, c), 1)
    w = jnp.where(col == lbl_ref[...], confidence + base, base)  # (TB, C)
    loss = lse - jnp.sum(w * x, axis=-1, keepdims=True)          # (TB, 1)

    # Mask the ragged tail rows of the last tile, then reduce to one scalar.
    row = (pl.program_id(0) * tile_rows
           + jax.lax.broadcasted_iota(jnp.int32, (tb, 1), 0))
    partial = jnp.sum(jnp.where(row < batch, loss, 0.0))

    # Lane-dense (8, 128) store: partial sum at [0, 0], zeros elsewhere.
    ri = jax.lax.broadcasted_iota(jnp.int32, (8, 128), 0)
    ci = jax.lax.broadcasted_iota(jnp.int32, (8, 128), 1)
    out_ref[...] = jnp.where((ri == 0) & (ci == 0), partial, 0.0)


def _ls_dense_kernel(x_ref, t_ref, out_ref, *, confidence, smoothing,
                     batch, tile_rows, assume_normalized):
    """Per-tile partial loss sum; targets are dense (soft) distributions."""
    x = x_ref[...].astype(jnp.float32)                         # (TB, C)
    t = t_ref[...].astype(jnp.float32)                         # (TB, C)
    tb, c = x.shape

    m = jnp.max(x, axis=-1, keepdims=True)
    lse = jnp.log(jnp.sum(jnp.exp(x - m), axis=-1, keepdims=True)) + m

    if assume_normalized:
        # Rows of `t` sum to 1: merge nll + smooth into one weighted reduce.
        w = t * confidence
        if smoothing != 0.0:
            w = w + smoothing / c
        loss = lse - jnp.sum(w * x, axis=-1, keepdims=True)
    else:
        # Exact translation of the PyTorch math for arbitrary target rows.
        tsum = jnp.sum(t, axis=-1, keepdims=True)
        tx = jnp.sum(t * x, axis=-1, keepdims=True)
        loss = confidence * (tsum * lse - tx)
        if smoothing != 0.0:
            loss = loss + smoothing * (lse - jnp.mean(x, axis=-1, keepdims=True))

    row = (pl.program_id(0) * tile_rows
           + jax.lax.broadcasted_iota(jnp.int32, (tb, 1), 0))
    partial = jnp.sum(jnp.where(row < batch, loss, 0.0))

    ri = jax.lax.broadcasted_iota(jnp.int32, (8, 128), 0)
    ci = jax.lax.broadcasted_iota(jnp.int32, (8, 128), 1)
    out_ref[...] = jnp.where((ri == 0) & (ci == 0), partial, 0.0)


def label_smoothing_loss(x, target, smoothing=0.1, training=True,
                         tile_rows=None, assume_normalized_target=True):
    """Pallas implementation of LabelSmoothing.forward.

    x:       (B, C) logits (f32 or bf16).
    target:  either (B,) / (B, 1) integer class indices (fast path: no dense
             target is ever streamed from HBM) or a dense (B, C) probability
             target (rows summing to 1 unless assume_normalized_target=False).
    Returns a scalar float32 loss (mean over the batch), matching
      training=True : mean(confidence * nll_loss + smoothing * smooth_loss)
      training=False: F.cross_entropy(x, target)  (mean reduction)
    """
    B, C = x.shape
    if training:
        confidence, smooth = 1.0 - smoothing, smoothing
    else:
        confidence, smooth = 1.0, 0.0

    use_labels = jnp.issubdtype(target.dtype, jnp.integer) or target.ndim == 1
    x_item = jnp.dtype(x.dtype).itemsize
    if use_labels:
        labels = target.reshape(B, 1).astype(jnp.int32)
        stream_item = x_item            # labels are 4 B/row -> negligible
        narrow = x_item
    else:
        assert target.shape == (B, C), (x.shape, target.shape)
        t_item = jnp.dtype(target.dtype).itemsize
        stream_item = x_item + t_item
        narrow = min(x_item, t_item)

    # Sublane granularity for the block row dim (bf16 packs 16 rows / vreg).
    sublane = 16 if narrow < 4 else 8

    vmem = _vmem_capacity_bytes()
    # Per-input, per-buffer block byte budget (2 inputs x double buffering
    # stays well under half of VMEM on every generation).
    block_budget = (3 if vmem <= 64 * 1024 * 1024 else 6) * 1024 * 1024
    if tile_rows is None:
        tb = (block_budget // max(1, C * stream_item)) // sublane * sublane
        tb = max(sublane, tb)
    else:
        tb = max(sublane, _round_up(tile_rows, sublane))
    if tb >= B:
        tb = B  # one whole-batch block (block dim == array dim is always legal)
    if B > sublane:
        # Keep >= 2 grid steps so the "parallel" axis can shard over both
        # TensorCores on v7x (and never collapse to a single serial step).
        tb = min(tb, _round_up(pl.cdiv(B, 2), sublane))
    n_tiles = pl.cdiv(B, tb)

    if use_labels:
        kernel = functools.partial(
            _ls_label_kernel, confidence=confidence, smoothing=smooth,
            batch=B, tile_rows=tb)
        second_in = labels
        second_spec = pl.BlockSpec((tb, 1), lambda i: (i, 0))
        t_bytes = B * 4
    else:
        kernel = functools.partial(
            _ls_dense_kernel, confidence=confidence, smoothing=smooth,
            batch=B, tile_rows=tb, assume_normalized=assume_normalized_target)
        second_in = target
        second_spec = pl.BlockSpec((tb, C), lambda i: (i, 0))
        t_bytes = B * C * jnp.dtype(target.dtype).itemsize

    cost = pl.CostEstimate(
        flops=6 * B * C,
        transcendentals=B * C,
        bytes_accessed=B * C * x_item + t_bytes + n_tiles * 8 * 128 * 4,
    )

    out = pl.pallas_call(
        kernel,
        out_shape=jax.ShapeDtypeStruct((8 * n_tiles, 128), jnp.float32),
        grid_spec=pltpu.PrefetchScalarGridSpec(
            num_scalar_prefetch=0,
            grid=(n_tiles,),
            in_specs=[
                pl.BlockSpec((tb, C), lambda i: (i, 0)),
                second_spec,
            ],
            out_specs=pl.BlockSpec((8, 128), lambda i: (i, 0)),
        ),
        compiler_params=pltpu.CompilerParams(
            dimension_semantics=("parallel",),
            vmem_limit_bytes=(vmem * 3) // 4,
        ),
        cost_estimate=cost,
    )(x, second_in)

    # Each tile wrote its partial sum at [8*i, 0] and zeros elsewhere.
    return jnp.sum(out) / B


if __name__ == "__main__":
    key = jax.random.PRNGKey(0)
    k_x, k_y = jax.random.split(key)

    B, C = 10, 128  # batch x num_classes (B deliberately not a multiple of 8)
    x = jax.random.normal(k_x, (B, C), dtype=jnp.float32)
    labels = jax.random.randint(k_y, (B,), 0, C, dtype=jnp.int32)
    target = jax.nn.one_hot(labels, C, dtype=jnp.float32)

    # Plain-JAX reference (original, un-simplified math).
    logp = jax.nn.log_softmax(x, axis=-1)
    nll = jnp.sum(-logp * target, axis=-1)
    smooth = jnp.mean(-logp, axis=-1)
    ref_train = jnp.mean(0.9 * nll + 0.1 * smooth)
    ref_eval = jnp.mean(nll)

    # 1) Training branch, dense soft target (original module signature).
    loss_dense = label_smoothing_loss(x, target, smoothing=0.1, training=True)
    jax.block_until_ready(loss_dense)
    assert jnp.allclose(loss_dense, ref_train, atol=1e-5, rtol=1e-5), (loss_dense, ref_train)

    # 2) Training branch, integer labels (fast path: target never streamed).
    loss_lbl = label_smoothing_loss(x, labels, smoothing=0.1, training=True)
    jax.block_until_ready(loss_lbl)
    assert jnp.allclose(loss_lbl, ref_train, atol=1e-5, rtol=1e-5), (loss_lbl, ref_train)

    # 3) Eval branch == F.cross_entropy(x, labels) with mean reduction.
    loss_eval = label_smoothing_loss(x, labels, smoothing=0.1, training=False)
    jax.block_until_ready(loss_eval)
    assert jnp.allclose(loss_eval, ref_eval, atol=1e-5, rtol=1e-5), (loss_eval, ref_eval)

    # 4) bf16 logits (kernel upcasts internally; halves HBM traffic for x).
    x_bf = x.astype(jnp.bfloat16)
    loss_bf = label_smoothing_loss(x_bf, labels, smoothing=0.1, training=True)
    jax.block_until_ready(loss_bf)
    logp_bf = jax.nn.log_softmax(x_bf.astype(jnp.float32), axis=-1)
    nll_bf = jnp.sum(-logp_bf * target, axis=-1)
    smooth_bf = jnp.mean(-logp_bf, axis=-1)
    ref_bf = jnp.mean(0.9 * nll_bf + 0.1 * smooth_bf)
    assert jnp.allclose(loss_bf, ref_bf, atol=1e-3, rtol=1e-3), (loss_bf, ref_bf)

    # 5) Dense path, non-normalized target rows, exact (no sum(t)==1) variant.
    target_un = target * 0.5
    loss_exact = label_smoothing_loss(x, target_un, smoothing=0.1, training=True,
                                      assume_normalized_target=False)
    jax.block_until_ready(loss_exact)
    nll_un = jnp.sum(-logp * target_un, axis=-1)
    ref_exact = jnp.mean(0.9 * nll_un + 0.1 * smooth)
    assert jnp.allclose(loss_exact, ref_exact, atol=1e-5, rtol=1e-5), (loss_exact, ref_exact)

    print("KERNEL_OK")
</pallas_src>

<mosaic_0001>
module attributes {stable_mosaic.version = 11 : i64} {
  func.func @_ls_dense_kernel(%arg0: i32, %arg1: memref<8x128xf32, #tpu.memory_space<vmem>>, %arg2: memref<8x128xf32, #tpu.memory_space<vmem>>, %arg3: memref<8x128xf32, #tpu.memory_space<vmem>>) attributes {dimension_semantics = [#tpu.dimension_semantics<parallel>], iteration_bounds = array<i64: 2>, scalar_prefetch = 0 : i64, scratch_operands = 0 : i64, tpu.core_type = #tpu.core_type<tc>, window_params = [{transform_indices = @transform_0, window_bounds = array<i64: 8, 128>}, {transform_indices = @transform_1, window_bounds = array<i64: 8, 128>}, {transform_indices = @transform_2, window_bounds = array<i64: 8, 128>}]} {
    %c0 = arith.constant 0 : index
    %c0_0 = arith.constant 0 : index
    %0 = vector.load %arg1[%c0, %c0_0] : memref<8x128xf32, #tpu.memory_space<vmem>>, vector<8x128xf32>
    %c0_1 = arith.constant 0 : index
    %c0_2 = arith.constant 0 : index
    %1 = vector.load %arg2[%c0_1, %c0_2] : memref<8x128xf32, #tpu.memory_space<vmem>>, vector<8x128xf32>
    %cst = arith.constant dense<0xFF800000> : vector<8xf32>
    %2 = vector.multi_reduction <maximumf>, %0, %cst [1] : vector<8x128xf32> to vector<8xf32>
    %3 = vector.shape_cast %2 : vector<8xf32> to vector<8x1xf32>
    %4 = vector.broadcast %3 : vector<8x1xf32> to vector<8x128xf32>
    %5 = arith.subf %0, %4 : vector<8x128xf32>
    %6 = math.exp %5 : vector<8x128xf32>
    %cst_3 = arith.constant dense<0.000000e+00> : vector<8xf32>
    %7 = vector.multi_reduction <add>, %6, %cst_3 [1] : vector<8x128xf32> to vector<8xf32>
    %8 = vector.shape_cast %7 : vector<8xf32> to vector<8x1xf32>
    %9 = math.log %8 : vector<8x1xf32>
    %10 = arith.addf %9, %3 : vector<8x1xf32>
    %cst_4 = arith.constant 0.899999976 : f32
    %11 = vector.broadcast %cst_4 : f32 to vector<8x128xf32>
    %12 = arith.mulf %1, %11 : vector<8x128xf32>
    %cst_5 = arith.constant 7.812500e-04 : f32
    %13 = vector.broadcast %cst_5 : f32 to vector<8x128xf32>
    %14 = arith.addf %12, %13 : vector<8x128xf32>
    %15 = arith.mulf %14, %0 : vector<8x128xf32>
    %cst_6 = arith.constant dense<0.000000e+00> : vector<8xf32>
    %16 = vector.multi_reduction <add>, %15, %cst_6 [1] : vector<8x128xf32> to vector<8xf32>
    %17 = vector.shape_cast %16 : vector<8xf32> to vector<8x1xf32>
    %18 = arith.subf %10, %17 : vector<8x1xf32>
    %c8_i32 = arith.constant 8 : i32
    %19 = arith.muli %arg0, %c8_i32 : i32
    %20 = tpu.iota {dimensions = array<i32: 0>} : vector<8x1xi32>
    %21 = vector.broadcast %19 : i32 to vector<8x1xi32>
    %22 = arith.addi %21, %20 : vector<8x1xi32>
    %c10_i32 = arith.constant 10 : i32
    %23 = vector.broadcast %c10_i32 : i32 to vector<8x1xi32>
    %24 = arith.cmpi slt, %22, %23 : vector<8x1xi32>
    %cst_7 = arith.constant 0.000000e+00 : f32
    %25 = vector.broadcast %cst_7 : f32 to vector<8x1xf32>
    %26 = arith.select %24, %18, %25 : vector<8x1xi1>, vector<8x1xf32>
    %27 = vector.shape_cast %26 : vector<8x1xf32> to vector<1x8x1xf32>
    %cst_8 = arith.constant dense<0.000000e+00> : vector<1xf32>
    %28 = vector.multi_reduction <add>, %27, %cst_8 [1, 2] : vector<1x8x1xf32> to vector<1xf32>
    %29 = vector.shape_cast %28 : vector<1xf32> to vector<1x1x1xf32>
    %30 = vector.extract %29[0, 0, 0] : f32 from vector<1x1x1xf32>
    %31 = tpu.iota {dimensions = array<i32: 0>} : vector<8x128xi32>
    %32 = tpu.iota {dimensions = array<i32: 1>} : vector<8x128xi32>
    %c0_i32 = arith.constant 0 : i32
    %33 = vector.broadcast %c0_i32 : i32 to vector<8x128xi32>
    %34 = arith.cmpi eq, %31, %33 : vector<8x128xi32>
    %c0_i32_9 = arith.constant 0 : i32
    %35 = vector.broadcast %c0_i32_9 : i32 to vector<8x128xi32>
    %36 = arith.cmpi eq, %32, %35 : vector<8x128xi32>
    %37 = arith.andi %34, %36 : vector<8x128xi1>
    %cst_10 = arith.constant 0.000000e+00 : f32
    %38 = vector.broadcast %30 : f32 to vector<8x128xf32>
    %39 = vector.broadcast %cst_10 : f32 to vector<8x128xf32>
    %40 = arith.select %37, %38, %39 : vector<8x128xi1>, vector<8x128xf32>
    %c0_11 = arith.constant 0 : index
    %c0_12 = arith.constant 0 : index
    %41 = vector.load %arg3[%c0_11, %c0_12] : memref<8x128xf32, #tpu.memory_space<vmem>>, vector<8x128xf32>
    tpu.vector_store %arg3[%c0_11, %c0_12], %40 {strides = array<i32>} : memref<8x128xf32, #tpu.memory_space<vmem>>, vector<8x128xf32>,
    return
  }
  func.func @transform_0(%arg0: i32) -> (i32, i32) {
    %c0_i32 = arith.constant 0 : i32
    %c0_i32_0 = arith.constant 0 : i32
    return %arg0, %c0_i32 : i32, i32
  }
  func.func @transform_1(%arg0: i32) -> (i32, i32) {
    %c0_i32 = arith.constant 0 : i32
    %c0_i32_0 = arith.constant 0 : i32
    return %arg0, %c0_i32 : i32, i32
  }
  func.func @transform_2(%arg0: i32) -> (i32, i32) {
    %c0_i32 = arith.constant 0 : i32
    %c0_i32_0 = arith.constant 0 : i32
    return %arg0, %c0_i32 : i32, i32
  }
}

</mosaic_0001>

<bundles_post_ra>
// kernel: tpu_custom_call.1
= control target key start
LH: loop header
LB: loop body
LE: loop exit
PB: predicated region body
PF: predicated region fallthrough
CT: control target
= control target key end

     0   :  { %7 = vsyncpa [#allocation3], 0  ;;  %s770_s0 = inlined_call_operand.hbm [shape: f32[10,128], index: 0, kind: input, shape index: {}]   ;;  %s771_s1 = inlined_call_operand.hbm [shape: f32[10,128], index: 1, kind: input, shape index: {}]   ;;  %s772_s2 = inlined_call_operand.hbm [shape: f32[16,128], index: 2, kind: output, shape index: {}]  }
   0x1   :  { %9 = vsyncpa [#allocation3 + $0x1], 0 }
   0x2   :  { %10 = vsyncpa [#allocation6], 0 }
   0x3   :  { %12 = vsyncpa [#allocation6 + $0x1], 0 }
   0x4   :  { %13 = vsyncpa [#allocation4], 0 }
   0x5   :  { %15 = vsyncpa [#allocation4 + $0x1], 0  ;;  %s564_s9 = smov 0   ;;  %s566_s10 = smov 0  }
   0x6   :  { %s568_s11 = smov 0   ;;  %s570_s12 = smov 0  }
   0x7 LB: > { %s585_s13 = sadd.s32 4294967295, %s544_s12   ;;  %s347_s14 = sadd.s32 4294967294, %s544_s12   ;;  %s544_s12 = sphi %s570_s12, %s791_s12   ;;  %s540_s11 = sphi %s568_s11, %s790_s11   ;;  %s536_s10 = sphi %s566_s10, %s789_s10   ;;  %s532_s9 = sphi %s564_s9, %s788_s9  }
   0x8   : > { %s589_s15 = sadd.s32 1, %s544_s12   ;;  %s28_s16 = sadd.s32 1, %s540_s11 }
   0x9   : > { %s25_s17 = ssub.s32 %s544_s12, %s589_s15  ;;  %p35_p0 = scmp.ne.s32.totalorder %s540_s11, %s536_s10 }
   0xa   : > { %p26_p1 = scmp.eq.s32.totalorder %s25_s17, 0  ;;  %p36_p2 = scmp.eq.s32.totalorder %s544_s12, 0 }
   0xb   : > { %p41_p3 = scmp.ne.s32.totalorder %s536_s10, %s532_s9  ;;  %p42_p4 = scmp.eq.s32.totalorder %s585_s13, 0 }
   0xc   : > { %s601_s18 = scalar_select %p26_p1, %s540_s11, %s28_s16  }
   0xd   : > { %p603_p5 = por %p36_p2, %p35_p0  ;;  %p607_p6 = por %p42_p4, %p41_p3 }
   0xe   : > { %p91_p7 = scmp.eq.s32.totalorder %s585_s13, 1  ;;  %p97_p8 = scmp.eq.s32.totalorder %s347_s14, 1 }
   0xf   : > { %s776_s20 = scalar_select %p607_p6, 1, 0 }
  0x10   : > { %p382_p10 = scmp.lt.s32.totalorder %s544_s12, 2  ;;  %p614_p11 = por %p91_p7, %p35_p0 }
  0x11   : > { %p618_p12 = por %p97_p8, %p41_p3  ;;  %s623_s23 = sand.u32 1, %s540_s11  }
  0x12   : > { %s777_s21 = scalar_select %p614_p11, 1, 0 }
  0x13   : > { %s778_s22 = scalar_select %p618_p12, 1, 0 }
  0x14   : > { %s351_s24 = sshll.u32 %s544_s12, 7  ;;  %s350_s25 = sshll.u32 %s623_s23, 3 }
  0x15   : > { %s632_s28 = scalar_lea.hbm %s770_s0, %s351_s24  ;;  %s121_s29 = scalar_lea.vmem [#allocation2], %s350_s25 }
  0x16   : > { %s128_s30 = sshll.u32 %s121_s29, 4  ;;  %p638_p13 = pnand %p382_p10, %p603_p5  ;;  %s642_s30 = int_to_ptr.vmem [resolvable:$true] %s128_s30 }
  0x17   : > { %s118_s4 = scalar_lea.sflag [#allocation3], %s623_s23  ;;  %s420_s5 = scalar_lea.hbm %s632_s28, 128 }
  0x18   : > { %p421_p2 = scmp.ne.s32.totalorder %s632_s28, %s420_s5  ;;  %p422_p3 = pneg %p638_p13 }
  0x19   : > { %s425_s8 = scalar_lea.hbm %s770_s0, 256  ;;  %p426_p5 = scmp.lt.s32.totalorder %s632_s28, %s770_s0 }
  0x1a   : > { %p423_p4 = pnand %p422_p3, %p421_p2  ;;  %p427_p8 = scmp.lt.s32.totalorder %s425_s8, %s420_s5 }
  0x1c   : > { %p424_p7 = pneg %p423_p4  ;;  %p428_p10 = por %p427_p8, %p426_p5 }
  0x1e   : > { %p429_p9 = pnand %p428_p10, %p424_p7 }
  0x20   : > { %432 = shalt.err (!%p429_p9)
}
  0x21   : > { %s433_s17 = scalar_lea.vmem %s642_s30, 128  ;;  %s546_s19 = smov [#allocation2]  }
  0x22   : > { %p434_p0 = scmp.ne.s32.totalorder %s642_s30, %s433_s17  ;;  %s438_s26 = sshll.u32 %s546_s19, 4  ;;  %s439_s26 = int_to_ptr.vmem [resolvable:$false] %s438_s26 }
  0x23   : > { %s440_s27 = scalar_lea.vmem %s439_s26, 256  ;;  %p441_p1 = scmp.lt.s32.totalorder %s642_s30, %s439_s26 }
  0x24   : > { %p436_p2 = pnand %p434_p0, %p422_p3  ;;  %p442_p12 = scmp.lt.s32.totalorder %s440_s27, %s433_s17 }
  0x26   : > { %p437_p4 = pneg %p436_p2  ;;  %p443_p11 = por %p442_p12, %p441_p1 }
  0x28   : > { %p444_p5 = pnand %p443_p11, %p437_p4 }
  0x2a   : > { %447 = shalt.err (!%p444_p5)
}
  0x2b   : > { %374 = dma.hbm_to_vmem [thread:$0]  (!%p638_p13), %s632_s28, 128, %s642_s30, %s118_s4  }
  0x2c   : > { %p780_p9 = scmp.lt.s32.totalorder %s544_s12, 3  ;;  %p781_p0 = scmp.ge.s32.totalorder %s544_s12, 1 }
  0x2d   : > { %s684_s7 = scalar_lea.hbm %s771_s1, %s351_s24  ;;  %s139_s8 = scalar_lea.vmem [#allocation5], %s350_s25 }
  0x2e   : > { %p675_p7 = pnand %p781_p0, %p780_p9  ;;  %s146_s14 = sshll.u32 %s139_s8, 4  ;;  %s147_s14 = int_to_ptr.vmem [resolvable:$true] %s146_s14 }
  0x2f   : > { %s136_s28 = scalar_lea.sflag [#allocation6], %s623_s23  ;;  %s448_s30 = scalar_lea.hbm %s684_s7, 128 }
  0x30   : > { %s782_s29 = scalar_select %p675_p7, 1, 0 }
  0x31   : > { %p449_p11 = scmp.ne.s32.totalorder %s684_s7, %s448_s30  ;;  %s453_s17 = scalar_lea.hbm %s771_s1, 256 }
  0x32   : > { %p454_p8 = scmp.lt.s32.totalorder %s684_s7, %s771_s1  ;;  %p455_p10 = scmp.lt.s32.totalorder %s453_s17, %s448_s30 }
  0x33   : > { %p451_p12 = pnand %p449_p11, %p422_p3 }
  0x34   : > { %p456_p2 = por %p455_p10, %p454_p8 }
  0x35   : > { %p452_p1 = pneg %p451_p12 }
  0x37   : > { %p457_p4 = pnand %p456_p2, %p452_p1 }
  0x39   : > { %460 = shalt.err (!%p457_p4)
}
  0x3a   : > { %s461_s25 = scalar_lea.vmem %s147_s14, 128  ;;  %s547_s23 = smov [#allocation5]  }
  0x3b   : > { %p462_p5 = scmp.ne.s32.totalorder %s147_s14, %s461_s25  ;;  %s466_s26 = sshll.u32 %s547_s23, 4  ;;  %s467_s26 = int_to_ptr.vmem [resolvable:$false] %s466_s26 }
  0x3c   : > { %s468_s27 = scalar_lea.vmem %s467_s26, 256  ;;  %p469_p11 = scmp.lt.s32.totalorder %s147_s14, %s467_s26 }
  0x3d   : > { %p464_p9 = pnand %p462_p5, %p422_p3  ;;  %p470_p12 = scmp.lt.s32.totalorder %s468_s27, %s461_s25 }
  0x3f   : > { %p465_p0 = pneg %p464_p9  ;;  %p471_p6 = por %p470_p12, %p469_p11 }
  0x41   : > { %p472_p7 = pnand %p471_p6, %p465_p0 }
  0x43   : > { %475 = shalt.err (!%p472_p7)
}
  0x44   : > { %377 = dma.hbm_to_vmem [thread:$0]  (!%p638_p13), %s684_s7, 128, %s147_s14, %s136_s28  }
  0x45   : > { %p783_p1 = scmp.ne.s32.totalorder %s782_s29, 0 }
  0x46   : > { %s710_s5 = sand.u32 (!%p783_p1), 1, %s536_s10   ;;  %p784_p6 = scmp.ne.s32.totalorder (!%p783_p1), %s776_s20, 0 }
  0x47   : > { %155 = sbr.rel (%p783_p1) target bundleno = 611 (0x263), region = 28  ;;  %s713_s6 = sshll.u32 (!%p783_p1), %s710_s5, 3 }
  0x48   : > { %s158_s8 = scalar_lea.sflag (!%p783_p1), [#allocation3], %s710_s5  ;;  %s161_s30 = scalar_lea.vmem (!%p783_p1), [#allocation2], %s713_s6 }
  0x4c   : > { %519 = dma.done.wait (%p784_p6), %s158_s8, 128  }
  0x4d   : > { %521 = vsyncadd (%p784_p6), %s158_s8, 4294967168  ;;  %s167_s3 = scalar_lea.sflag [#allocation6], %s710_s5  ;;  %s170_s29 = scalar_lea.vmem [#allocation5], %s713_s6 }
  0x4e   : > { %523 = dma.done.wait (%p784_p6), %s167_s3, 128  }
  0x4f   : > { %525 = vsyncadd (%p784_p6), %s167_s3, 4294967168  ;;  %v196_v0 = vld [vmem:[%s161_s30] sm:$0xff]  ;;  %v197_v1 = vld [vmem:[%s170_s29] sm:$0xff]  ;;  %v215_v10 = vlaneseq  ;;  %s358_s7 = sshll.u32 %s585_s13, 3  ;;  %vm221_vm1 = vcmask 7168   ;;  %s360_s20 = sshll.u32 %s585_s13, 7 }
  0x50   : > { %198 = vmax.xlane.f32.xlu0 %v196_v0  ;;  %v208_v2 = vmul.f32 0.9, %v197_v1  ;;  %v217_v12 = vstv %s358_s7  ;;  %s195_s14 = scalar_lea.vmem [#allocation7], %s713_s6  ;;  %s733_s24 = scalar_lea.hbm %s772_s2, %s360_s20 }
  0x51   : > { %v216_v11 = vshrl.u32 %v215_v10, 7  ;;  %v233_v28 = vand.u32 127, %v215_v10  ;;  %s254_s28 = sshll.u32 %s195_s14, 4  ;;  %s241_s19 = scalar_lea.sflag [#allocation4], %s710_s5  ;;  %s255_s28 = int_to_ptr.vmem [resolvable:$true] %s254_s28 }
  0x52   : > { %v209_v3 = vadd.f32 0.00078125, %v208_v2  ;;  %s476_s25 = scalar_lea.vmem %s255_s28, 128  ;;  %p785_p3 = scmp.ne.s32.totalorder %s777_s21, 0 }
  0x53   : > { %v218_v14 = vadd.s32 %v217_v12, %v216_v11  ;;  %vm234_vm2 = vcmp.eq.s32.totalorder %v216_v11, 0  ;;  %vm235_vm3 = vcmp.eq.s32.totalorder %v233_v28, 0  ;;  %p477_p13 = scmp.ne.s32.totalorder %s255_s28, %s476_s25  ;;  %s548_s13 = smov [#allocation7]  }
  0x54   : > { %v210_v4 = vmul.f32 %v209_v3, %v196_v0  ;;  %vm236_vm4 = vmand %vm234_vm2, %vm235_vm3  ;;  %s480_s23 = sshll.u32 %s548_s13, 4  ;;  %s481_s23 = int_to_ptr.vmem [resolvable:$false] %s480_s23 }
  0x55   : > { %vm219_vm0 = vcmp.lt.s32.totalorder %v218_v14, 10  ;;  %p478_p7 = pnand %p477_p13, %p785_p3  ;;  %s482_s26 = scalar_lea.vmem %s481_s23, 256 }
  0x56   : > { %211 = vadd.xlane.f32.xlu1 %v210_v4  ;;  %p483_p10 = scmp.lt.s32.totalorder %s255_s28, %s481_s23  ;;  %p484_p2 = scmp.lt.s32.totalorder %s482_s26, %s476_s25 }
  0x57   : > { %p479_p8 = pneg %p478_p7 }
  0x58   : > { %p485_p4 = por %p484_p2, %p483_p10 }
  0x5a   : > { %p486_p5 = pnand %p485_p4, %p479_p8 }
  0xd9   : > { %v199_v5 = vpop.xlane.xlu0 %198 }
  0xda   : > { %v200_v6 = vsub.f32 %v196_v0, %v199_v5 }
  0xdc   : > { %v201_v7 = vmul.f32 1.442695, %v200_v6 }
  0xde   : > { %416 = vpow2.f32 %v201_v7 }
  0xdf   : > { %v212_v16 = vpop.xlane.xlu1 %211 }
  0xeb   : > { %v417_v8 = vpop.eup %416 }
  0xec   : > { %203 = vadd.xlane.f32.xlu0 %v417_v8 }
 0x175   : > { %v204_v9 = vpop.xlane.xlu0 %203 }
 0x176   : > { %418 = vlog2.f32 %v204_v9 }
 0x183   : > { %v419_v13 = vpop.eup %418 }
 0x184   : > { %v206_v15 = vmul.f32 0.6931472, %v419_v13 }
 0x186   : > { %v207_v17 = vadd.f32 %v206_v15, %v199_v5 }
 0x188   : > { %v213_v18 = vsub.f32 %v207_v17, %v212_v16 }
 0x18a   : > { %v220_v19 = vsel %vm219_vm0, %v213_v18, 0.0 }
 0x18b   : > { %v222_v20 = vsel %vm221_vm1, %v220_v19, 0.0 }
 0x18c   : > { %223 = vadd.xlane.f32.xlu1 %v222_v20 }
 0x215   : > { %v224_v21 = vpop.xlane.xlu1 %223 }
 0x216   : > { %v225_v22 = vrot.slane %v224_v21, 4 }
 0x218   : > { %v226_v23 = vadd.f32 %v225_v22, %v224_v21 }
 0x21a   : > { %v227_v24 = vrot.slane %v226_v23, 2 }
 0x21c   : > { %v228_v25 = vadd.f32 %v227_v24, %v226_v23 }
 0x21e   : > { %v229_v26 = vrot.slane %v228_v25, 1 }
 0x220   : > { %v230_v27 = vadd.f32 %v229_v26, %v228_v25 }
 0x222   : > { %363 = vpush %v230_v27 }
 0x253   : > { %s364_s4 = spop %363 }
 0x254   : > { %v237_v29 = vstv %s364_s4 }
 0x255   : > { %v238_v30 = vsel %vm236_vm4, %v237_v29, 0.0 }
 0x256   : > { %239 = vst [vmem:[%s195_s14] sm:$0xff] %v238_v30 }
 0x257   : > { %489 = shalt.err (!%p486_p5)
}
 0x258   : > { %s490_s27 = scalar_lea.hbm %s733_s24, 128  ;;  %s494_s8 = scalar_lea.hbm %s772_s2, 256 }
 0x259   : > { %p491_p9 = scmp.ne.s32.totalorder %s733_s24, %s490_s27  ;;  %p495_p12 = scmp.lt.s32.totalorder %s733_s24, %s772_s2 }
 0x25a   : > { %p496_p1 = scmp.lt.s32.totalorder %s494_s8, %s490_s27 }
 0x25b   : > { %p492_p0 = pnand %p491_p9, %p785_p3 }
 0x25c   : > { %p497_p6 = por %p496_p1, %p495_p12 }
 0x25d   : > { %p493_p11 = pneg %p492_p0 }
 0x25f   : > { %p498_p13 = pnand %p497_p6, %p493_p11 }
 0x261   : > { %501 = shalt.err (!%p498_p13)
}
 0x262   : > { %369 = dma.vmem_to_hbm [thread:$0]  (%p785_p3), %s255_s28, 128, %s733_s24, %s241_s19  }
 0x263 PF: > { %s266_s29 = sand.u32 1, %s532_s9   ;;  %p786_p7 = scmp.ne.s32.totalorder %s778_s22, 0 }
 0x264   : > { %p787_p8 = scmp.ge.s32.totalorder %s544_s12, 2  ;;  %s267_s7 = scalar_lea.sflag [#allocation4], %s266_s29 }
 0x266   : > { %p379_p10 = pnand %p787_p8, %p786_p7 }
 0x268   : > { %p380_p2 = pneg %p379_p10 }
 0x26a   : > { %527 = dma.done.wait (%p380_p2), %s267_s7, 128  }
 0x26b   : > { %529 = vsyncadd (%p380_p2), %s267_s7, 4294967168  ;;  %p18_p4 = scmp.ge.s32.totalorder %s589_s15, 4   ;;  %s788_s9 = smov %s536_s10 }
 0x26c   : > { %s789_s10 = smov %s540_s11  ;;  %s790_s11 = smov %s601_s18 }
 0x26d   : > { %s791_s12 = smov %s589_s15  ;;  %20 = sbr.rel (!%p18_p4) target bundleno = 7 (0x7), region = 86 }
 0x272   :  { %272 = vsyncpa [#allocation3], 1 }
 0x273   :  { %274 = vsyncpa [#allocation3 + $0x1], 1 }
 0x274   :  { %275 = vsyncpa [#allocation6], 1 }
 0x275   :  { %277 = vsyncpa [#allocation6 + $0x1], 1 }
 0x276   :  { %278 = vsyncpa [#allocation4], 1 }
 0x277   :  { %280 = vsyncpa [#allocation4 + $0x1], 1 }

</bundles_post_ra>
